<compile_context>
chip_gen: v7x
topology: tpu7x:2x2x1
jax: 0.10.0
libtpu: 0.0.40
codegen_flags: <defaults>
</compile_context>

<pallas_src>
import jax
import jax.numpy as jnp
from jax.experimental import pallas as pl
from jax.experimental.pallas import tpu as pltpu


def _round_up(x, m):
    return ((x + m - 1) // m) * m


def rbf_kernel(x_ref, xnorm_ref, ctm2_ref, kpar_ref, wt_ref, b_ref, o_ref):
    # x_ref:     (TN, Dp)  bf16  input rows (one N-tile), zero-padded
    # xnorm_ref: (TN, 1)   f32   ||x_n||^2 (precomputed in the wrapper)
    # ctm2_ref:  (Dp, Kp)  bf16  -2 * centers^T (zero-padded)
    # kpar_ref:  (2,  Kp)  f32   row 0: ||c_k||^2, row 1: beta_k (0 in padding)
    # wt_ref:    (Kp, Cp)  bf16  linear weight transposed (zero-padded)
    # b_ref:     (1,  Cp)  f32   linear bias (zero-padded)
    # o_ref:     (TN, Cp)  f32   class scores

    # Squared distances via the Gram identity; the -2 is pre-folded into ctm2,
    # so the O(N*K*D) work is a single bf16 MXU matmul with f32 accumulation.
    gram_m2 = jnp.dot(x_ref[...], ctm2_ref[...],
                      preferred_element_type=jnp.float32)        # (TN, Kp) f32

    kpar = kpar_ref[...]                                         # (2, Kp) f32
    cnorm = kpar[0:1, :]                                          # (1, Kp)
    beta = kpar[1:2, :]                                           # (1, Kp)

    d2 = xnorm_ref[...] + cnorm + gram_m2                         # (TN, Kp) f32
    # Clamp: floating-point cancellation can make d2 slightly negative.
    dist = jnp.sqrt(jnp.maximum(d2, 0.0))
    hx = jnp.exp(-beta * dist)                                    # (TN, Kp) f32

    # Classifier matmul on the MXU (bf16 in, f32 acc); bias added in f32.
    # Padded-K rows of wt are zero, so hx==1 columns from padded centers
    # (beta=0 there) contribute nothing.
    o_ref[...] = (
        jnp.dot(hx.astype(jnp.bfloat16), wt_ref[...],
                preferred_element_type=jnp.float32)
        + b_ref[...]
    )


def rbf_net2_prepack(centers, beta, weight, bias):
    """One-time parameter relayout (constant across forward calls)."""
    k = centers.shape[0]
    c2d = centers.reshape(k, -1).astype(jnp.float32)              # (K, D)
    d = c2d.shape[1]
    num_class = weight.shape[0]

    kp = _round_up(k, 128)
    cp = _round_up(num_class, 128)
    dp = _round_up(d, 128)

    c_p = jnp.zeros((kp, dp), jnp.float32).at[:k, :d].set(c2d)
    ctm2 = (-2.0 * c_p.T).astype(jnp.bfloat16)                    # (Dp, Kp) bf16
    cnorm = jnp.sum(c_p * c_p, axis=-1)                           # (Kp,) f32
    beta_row = jnp.zeros((kp,), jnp.float32).at[:k].set(
        beta.reshape(-1).astype(jnp.float32))
    kpar = jnp.stack([cnorm, beta_row], axis=0)                   # (2, Kp) f32

    wt = jnp.zeros((kp, cp), jnp.bfloat16).at[:k, :num_class].set(
        weight.T.astype(jnp.bfloat16))                            # (Kp, Cp) bf16
    b_row = jnp.zeros((1, cp), jnp.float32).at[:, :num_class].set(
        bias.reshape(1, num_class).astype(jnp.float32))           # (1, Cp) f32

    return dict(ctm2=ctm2, kpar=kpar, wt=wt, b=b_row,
                d=d, dp=dp, kp=kp, cp=cp, num_class=num_class)


def rbf_net2_forward(batches, packed, *, n_tile_max=1024):
    """batches: (N, C, H, W) or (N, D); packed: output of rbf_net2_prepack."""
    n = batches.shape[0]
    d, dp, kp, cp = packed["d"], packed["dp"], packed["kp"], packed["cp"]

    x2d = batches.reshape(n, -1).astype(jnp.float32)              # (N, D)
    assert x2d.shape[1] == d, "input feature size must match centers"

    # ||x||^2 hoisted out of the kernel (fuses with the pass that reads x).
    xnorm = jnp.sum(x2d * x2d, axis=-1, keepdims=True)            # (N, 1) f32
    x_bf16 = x2d.astype(jnp.bfloat16)

    # Tile sizing:
    #  - keep the double-buffered working set under ~12 MiB so even the v5e
    #    16 MiB scoped-VMEM default is safe without extra flags,
    #  - aim for >= 2 grid steps at realistic N so v7x's 2 TensorCores are
    #    both used (no-op for tiny N and on single-core v5e/v6e).
    per_row_bytes = dp * 2 + cp * 4 + 4                # x(bf16) + out(f32) + xnorm
    const_bytes = dp * kp * 2 + 2 * kp * 4 + kp * cp * 2 + cp * 4
    vmem_budget = 12 * 1024 * 1024
    max_rows = max(8, (((vmem_budget // 2) - const_bytes) // per_row_bytes)
                   // 8 * 8)
    half_n = _round_up(max(1, -(-n // 2)), 8)
    n_tile = max(8, min(n_tile_max, max_rows, half_n))
    np_ = _round_up(n, n_tile)

    # D is padded only if it is not already a multiple of 128; N only to the
    # tile height -- for aligned shapes x is fed through with no extra copy.
    if np_ != n or dp != d:
        x_in = jnp.zeros((np_, dp), jnp.bfloat16).at[:n, :d].set(x_bf16)
        xnorm_in = jnp.zeros((np_, 1), jnp.float32).at[:n].set(xnorm)
    else:
        x_in, xnorm_in = x_bf16, xnorm

    grid = (np_ // n_tile,)
    out = pl.pallas_call(
        rbf_kernel,
        out_shape=jax.ShapeDtypeStruct((np_, cp), jnp.float32),
        grid=grid,
        in_specs=[
            pl.BlockSpec((n_tile, dp), lambda i: (i, 0)),   # x (bf16), tiled N
            pl.BlockSpec((n_tile, 1), lambda i: (i, 0)),    # ||x||^2 (f32)
            pl.BlockSpec((dp, kp), lambda i: (0, 0)),       # -2 * C^T (bf16)
            pl.BlockSpec((2, kp), lambda i: (0, 0)),        # [||c||^2; beta]
            pl.BlockSpec((kp, cp), lambda i: (0, 0)),       # W^T (bf16)
            pl.BlockSpec((1, cp), lambda i: (0, 0)),        # bias (f32)
        ],
        out_specs=pl.BlockSpec((n_tile, cp), lambda i: (i, 0)),
        compiler_params=pltpu.CompilerParams(
            dimension_semantics=("parallel",)
        ),
    )(x_in, xnorm_in, packed["ctm2"], packed["kpar"], packed["wt"], packed["b"])
    # Consumers that can take the padded (Np, Cp) slab could skip this slice.
    return out[:n, :packed["num_class"]]


def rbf_net2_reference(batches, centers, beta, weight, bias):
    """Pure-JAX f32 reference mirroring the PyTorch forward exactly."""
    n = batches.shape[0]
    k = centers.shape[0]
    x2d = batches.reshape(n, -1).astype(jnp.float32)
    c2d = centers.reshape(k, -1).astype(jnp.float32)
    diff = c2d[None, :, :] - x2d[:, None, :]
    dist = jnp.sqrt(jnp.sum(diff * diff, axis=-1))
    hx = jnp.exp(-beta.reshape(1, k) * dist)
    return hx @ weight.T + bias.reshape(1, -1)


if __name__ == "__main__":
    # Small shapes consistent with the module's forward:
    #   input batch: (N=2, C=4, H=16, W=16)  -> D = 1024
    #   centers:     (K=32, 4, 16, 16)
    #   num_class = 10
    N, C, H, W = 2, 4, 16, 16
    K = 32
    NUM_CLASS = 10

    key = jax.random.PRNGKey(0)
    k_x, k_c, k_w, k_b = jax.random.split(key, 4)

    x = jax.random.normal(k_x, (N, C, H, W), dtype=jnp.float32)
    centers = jax.random.normal(k_c, (K, C, H, W), dtype=jnp.float32)

    # Deterministic parameter init (shapes from __init__):
    # beta = ones(1, num_centers) / 10 ; Linear(num_centers, num_class, bias=True)
    beta = jnp.ones((1, K), dtype=jnp.float32) / 10.0
    bound = 1.0 / jnp.sqrt(jnp.float32(K))
    weight = jax.random.uniform(
        k_w, (NUM_CLASS, K), minval=-bound, maxval=bound, dtype=jnp.float32
    )
    bias = jax.random.uniform(
        k_b, (NUM_CLASS,), minval=-bound, maxval=bound, dtype=jnp.float32
    )

    packed = rbf_net2_prepack(centers, beta, weight, bias)
    out = rbf_net2_forward(x, packed)
    out = jax.block_until_ready(out)

    ref = rbf_net2_reference(x, centers, beta, weight, bias)
    assert out.shape == (N, NUM_CLASS)
    # Slightly looser than pure-f32 tolerance because both matmuls run in
    # bf16 (f32 accumulation); distance/exp/bias math stays in f32.
    assert jnp.allclose(out, ref, rtol=2e-3, atol=2e-3), "mismatch vs reference"

    print("KERNEL_OK")
</pallas_src>

<mosaic_0001>
module attributes {stable_mosaic.version = 11 : i64} {
  func.func @rbf_kernel(%arg0: i32, %arg1: memref<8x1024xbf16, #tpu.memory_space<vmem>>, %arg2: memref<8x1xf32, #tpu.memory_space<vmem>>, %arg3: memref<1024x128xbf16, #tpu.memory_space<vmem>>, %arg4: memref<2x128xf32, #tpu.memory_space<vmem>>, %arg5: memref<128x128xbf16, #tpu.memory_space<vmem>>, %arg6: memref<1x128xf32, #tpu.memory_space<vmem>>, %arg7: memref<8x128xf32, #tpu.memory_space<vmem>>) attributes {dimension_semantics = [#tpu.dimension_semantics<parallel>], iteration_bounds = array<i64: 1>, scalar_prefetch = 0 : i64, scratch_operands = 0 : i64, tpu.core_type = #tpu.core_type<tc>, window_params = [{transform_indices = @transform_0, window_bounds = array<i64: 8, 1024>}, {transform_indices = @transform_1, window_bounds = array<i64: 8, 1>}, {pipeline_mode = #tpu.pipeline_mode<synchronous>, transform_indices = @transform_2, window_bounds = array<i64: 1024, 128>}, {pipeline_mode = #tpu.pipeline_mode<synchronous>, transform_indices = @transform_3, window_bounds = array<i64: 2, 128>}, {pipeline_mode = #tpu.pipeline_mode<synchronous>, transform_indices = @transform_4, window_bounds = array<i64: 128, 128>}, {pipeline_mode = #tpu.pipeline_mode<synchronous>, transform_indices = @transform_5, window_bounds = array<i64: 1, 128>}, {transform_indices = @transform_6, window_bounds = array<i64: 8, 128>}]} {
    %c0 = arith.constant 0 : index
    %c0_0 = arith.constant 0 : index
    %0 = vector.load %arg1[%c0, %c0_0] : memref<8x1024xbf16, #tpu.memory_space<vmem>>, vector<8x1024xbf16>
    %c0_1 = arith.constant 0 : index
    %c0_2 = arith.constant 0 : index
    %1 = vector.load %arg3[%c0_1, %c0_2] : memref<1024x128xbf16, #tpu.memory_space<vmem>>, vector<1024x128xbf16>
    %cst = arith.constant dense<0.000000e+00> : vector<8x128xf32>
    %2 = tpu.matmul %0, %1, %cst {dimension_numbers = #tpu.dot_dimension_numbers<[1], [0], [0], [1], [0, 0, 1, 1], [], []>} : vector<8x1024xbf16>, vector<1024x128xbf16>, vector<8x128xf32> -> vector<8x128xf32>
    %c0_3 = arith.constant 0 : index
    %c0_4 = arith.constant 0 : index
    %3 = vector.load %arg4[%c0_3, %c0_4] : memref<2x128xf32, #tpu.memory_space<vmem>>, vector<2x128xf32>
    %4 = vector.extract_strided_slice %3 {offsets = [0, 0], sizes = [1, 128], strides = [1, 1]} : vector<2x128xf32> to vector<1x128xf32>
    %5 = vector.extract_strided_slice %3 {offsets = [1, 0], sizes = [1, 128], strides = [1, 1]} : vector<2x128xf32> to vector<1x128xf32>
    %c0_5 = arith.constant 0 : index
    %c0_6 = arith.constant 0 : index
    %6 = vector.load %arg2[%c0_5, %c0_6] : memref<8x1xf32, #tpu.memory_space<vmem>>, vector<8x1xf32>
    %7 = vector.broadcast %6 : vector<8x1xf32> to vector<8x128xf32>
    %8 = vector.broadcast %4 : vector<1x128xf32> to vector<8x128xf32>
    %9 = arith.addf %7, %8 : vector<8x128xf32>
    %10 = arith.addf %9, %2 : vector<8x128xf32>
    %cst_7 = arith.constant 0.000000e+00 : f32
    %11 = vector.broadcast %cst_7 : f32 to vector<8x128xf32>
    %12 = arith.maximumf %10, %11 : vector<8x128xf32>
    %13 = math.sqrt %12 : vector<8x128xf32>
    %cst_8 = arith.constant 0.000000e+00 : f32
    %14 = vector.broadcast %cst_8 : f32 to vector<1x128xf32>
    %15 = arith.subf %14, %5 : vector<1x128xf32>
    %16 = vector.broadcast %15 : vector<1x128xf32> to vector<8x128xf32>
    %17 = arith.mulf %16, %13 : vector<8x128xf32>
    %18 = math.exp %17 : vector<8x128xf32>
    %19 = arith.truncf %18 : vector<8x128xf32> to vector<8x128xbf16>
    %c0_9 = arith.constant 0 : index
    %c0_10 = arith.constant 0 : index
    %20 = vector.load %arg5[%c0_9, %c0_10] : memref<128x128xbf16, #tpu.memory_space<vmem>>, vector<128x128xbf16>
    %cst_11 = arith.constant dense<0.000000e+00> : vector<8x128xf32>
    %21 = tpu.matmul %19, %20, %cst_11 {dimension_numbers = #tpu.dot_dimension_numbers<[1], [0], [0], [1], [0, 0, 1, 1], [], []>} : vector<8x128xbf16>, vector<128x128xbf16>, vector<8x128xf32> -> vector<8x128xf32>
    %c0_12 = arith.constant 0 : index
    %c0_13 = arith.constant 0 : index
    %22 = vector.load %arg6[%c0_12, %c0_13] : memref<1x128xf32, #tpu.memory_space<vmem>>, vector<1x128xf32>
    %23 = vector.broadcast %22 : vector<1x128xf32> to vector<8x128xf32>
    %24 = arith.addf %21, %23 : vector<8x128xf32>
    %c0_14 = arith.constant 0 : index
    %c0_15 = arith.constant 0 : index
    %25 = vector.load %arg7[%c0_14, %c0_15] : memref<8x128xf32, #tpu.memory_space<vmem>>, vector<8x128xf32>
    tpu.vector_store %arg7[%c0_14, %c0_15], %24 {strides = array<i32>} : memref<8x128xf32, #tpu.memory_space<vmem>>, vector<8x128xf32>,
    return
  }
  func.func @transform_0(%arg0: i32) -> (i32, i32) {
    %c0_i32 = arith.constant 0 : i32
    %c0_i32_0 = arith.constant 0 : i32
    return %arg0, %c0_i32 : i32, i32
  }
  func.func @transform_1(%arg0: i32) -> (i32, i32) {
    %c0_i32 = arith.constant 0 : i32
    %c0_i32_0 = arith.constant 0 : i32
    return %arg0, %c0_i32 : i32, i32
  }
  func.func @transform_2(%arg0: i32) -> (i32, i32) {
    %c0_i32 = arith.constant 0 : i32
    %c0_i32_0 = arith.constant 0 : i32
    %c0_i32_1 = arith.constant 0 : i32
    return %c0_i32, %c0_i32_0 : i32, i32
  }
  func.func @transform_3(%arg0: i32) -> (i32, i32) {
    %c0_i32 = arith.constant 0 : i32
    %c0_i32_0 = arith.constant 0 : i32
    %c0_i32_1 = arith.constant 0 : i32
    return %c0_i32, %c0_i32_0 : i32, i32
  }
  func.func @transform_4(%arg0: i32) -> (i32, i32) {
    %c0_i32 = arith.constant 0 : i32
    %c0_i32_0 = arith.constant 0 : i32
    %c0_i32_1 = arith.constant 0 : i32
    return %c0_i32, %c0_i32_0 : i32, i32
  }
  func.func @transform_5(%arg0: i32) -> (i32, i32) {
    %c0_i32 = arith.constant 0 : i32
    %c0_i32_0 = arith.constant 0 : i32
    %c0_i32_1 = arith.constant 0 : i32
    return %c0_i32, %c0_i32_0 : i32, i32
  }
  func.func @transform_6(%arg0: i32) -> (i32, i32) {
    %c0_i32 = arith.constant 0 : i32
    %c0_i32_0 = arith.constant 0 : i32
    return %arg0, %c0_i32 : i32, i32
  }
}

</mosaic_0001>

<bundles_post_ra>
// kernel: tpu_custom_call.1
= control target key start
LH: loop header
LB: loop body
LE: loop exit
PB: predicated region body
PF: predicated region fallthrough
CT: control target
= control target key end

     0   :  { %11 = vsyncpa [#allocation3], 0  ;;  %s1419_s0 = inlined_call_operand.hbm [shape: bf16[8,1024], index: 0, kind: input, shape index: {}]   ;;  %s1420_s1 = inlined_call_operand.vmem [shape: f32[8,1], index: 1, kind: input, shape index: {}]   ;;  %s1421_s2 = inlined_call_operand.hbm [shape: bf16[1024,128], index: 2, kind: input, shape index: {}]   ;;  %s1422_s3 = inlined_call_operand.vmem [shape: f32[2,128], index: 3, kind: input, shape index: {}]   ;;  %s1423_s4 = inlined_call_operand.hbm [shape: bf16[128,128], index: 4, kind: input, shape index: {}]   ;;  %s1424_s5 = inlined_call_operand.vmem [shape: f32[1,128], index: 5, kind: input, shape index: {}]   ;;  %s1425_s6 = inlined_call_operand.hbm [shape: f32[8,128], index: 6, kind: output, shape index: {}]  }
   0x1   :  { %12 = vsyncpa [#allocation6], 0 }
   0x2   :  { %13 = vsyncpa [#allocation4], 0  ;;  %s1312_s21 = smov [#allocation5]   ;;  %s1218_s25 = scalar_lea.hbm %s1421_s2, 8192 }
   0x3   :  { %s31_s22 = sshll.u32 %s1312_s21, 4  ;;  %p1219_p0 = scmp.ne.s32.totalorder %s1421_s2, %s1218_s25  ;;  %s32_s22 = int_to_ptr.vmem [resolvable:$true] %s31_s22 }
   0x4   :  { %p1222_p1 = scmp.lt.u32.totalorder %s1218_s25, %s1421_s2 }
   0x6   :  { %p1224_p2 = pnand %p1222_p1, %p1219_p0 }
   0x8   :  { %1227 = shalt.err (!%p1224_p2)
}
   0x9   :  { %s1228_s30 = scalar_lea.vmem %s32_s22, 8192  ;;  %p1233_p4 = scmp.lt.s32.totalorder %s32_s22, %s32_s22 }
   0xa   :  { %p1229_p3 = scmp.ne.s32.totalorder %s32_s22, %s1228_s30  ;;  %p1234_p5 = scmp.lt.s32.totalorder %s1228_s30, %s1228_s30 }
   0xc   :  { %p1235_p6 = por %p1234_p5, %p1233_p4 }
   0xe   :  { %p1236_p7 = pnand %p1235_p6, %p1229_p3 }
  0x10   :  { %1239 = shalt.err (!%p1236_p7)
}
  0x11   :  { %s1313_s7 = smov 64   ;;  %s1314_s8 = smov 4  }
  0x12   :  { %37 = dma.hbm_to_vmem [thread:$0]  %s1421_s2, 8192, %s32_s22, [#allocation6], %s1313_s7, %s1313_s7, %s1314_s8  }
  0x13   :  { %s1315_s11 = smov [#allocation2]   ;;  %s1316_s13 = smov [#allocation7]  }
  0x14   :  { %s20_s12 = sshll.u32 %s1315_s11, 4  ;;  %s45_s14 = sshll.u32 %s1316_s13, 4  ;;  %s21_s12 = int_to_ptr.vmem [resolvable:$true] %s20_s12  ;;  %s46_s14 = int_to_ptr.vmem [resolvable:$true] %s45_s14 }
  0x15   :  { %s1240_s17 = scalar_lea.hbm %s1419_s0, 512 }
  0x16   :  { %p1241_p8 = scmp.ne.s32.totalorder %s1419_s0, %s1240_s17  ;;  %p1244_p9 = scmp.lt.u32.totalorder %s1240_s17, %s1419_s0 }
  0x18   :  { %p1246_p10 = pnand %p1244_p9, %p1241_p8 }
  0x1a   :  { %1249 = shalt.err (!%p1246_p10)
}
  0x1b   :  { %s1250_s2 = scalar_lea.vmem %s21_s12, 512  ;;  %p1255_p12 = scmp.lt.s32.totalorder %s21_s12, %s21_s12 }
  0x1c   :  { %p1251_p11 = scmp.ne.s32.totalorder %s21_s12, %s1250_s2  ;;  %p1256_p13 = scmp.lt.s32.totalorder %s1250_s2, %s1250_s2 }
  0x1e   :  { %p1257_p0 = por %p1256_p13, %p1255_p12 }
  0x20   :  { %p1258_p1 = pnand %p1257_p0, %p1251_p11 }
  0x22   :  { %1261 = shalt.err (!%p1258_p1)
}
  0x23   :  { %23 = dma.hbm_to_vmem [thread:$0]  %s1419_s0, 512, %s21_s12, [#allocation3]  }
  0x24   :  { %s1262_s26 = scalar_lea.hbm %s1423_s4, 1024 }
  0x25   :  { %p1263_p2 = scmp.ne.s32.totalorder %s1423_s4, %s1262_s26  ;;  %p1266_p3 = scmp.lt.u32.totalorder %s1262_s26, %s1423_s4 }
  0x27   :  { %p1268_p4 = pnand %p1266_p3, %p1263_p2 }
  0x29   :  { %1271 = shalt.err (!%p1268_p4)
}
  0x2a   :  { %s1272_s9 = scalar_lea.vmem %s46_s14, 1024  ;;  %p1277_p6 = scmp.lt.s32.totalorder %s46_s14, %s46_s14 }
  0x2b   :  { %p1273_p5 = scmp.ne.s32.totalorder %s46_s14, %s1272_s9  ;;  %p1278_p7 = scmp.lt.s32.totalorder %s1272_s9, %s1272_s9 }
  0x2d   :  { %p1279_p8 = por %p1278_p7, %p1277_p6 }
  0x2f   :  { %p1280_p9 = pnand %p1279_p8, %p1273_p5 }
  0x31   :  { %1283 = shalt.err (!%p1280_p9)
}
  0x32   :  { %51 = dma.hbm_to_vmem [thread:$0]  %s1423_s4, 1024, %s46_s14, [#allocation6], %s1313_s7, %s1313_s7, %s1314_s8  }
  0x33   :  { %1306 = dma.done.wait [#allocation3], 512  }
  0x34   :  { %1307 = vsyncadd [#allocation3], 4294966784 }
  0x35   :  { %1308 = dma.done.wait [#allocation6], 9216  }
  0x36   :  { %1309 = vsyncadd [#allocation6], 4294958080  ;;  %v1317_v0 = vmov 0   ;;  %v1134_v1 = vld [vmem:[#allocation5 + $0x40] sm:$0xff]   ;;  %v1138_v5 = vld [vmem:[#allocation5 + $0x48] sm:$0xff]   ;;  %vm1319_vm0 = vmmov 0  }
  0x37   :  { %1133 = vset.pattern.permute.xlu0 %v1317_v0  ;;  %v1135_v2 = vld [vmem:[#allocation5 + $0xc0] sm:$0xff]   ;;  %1007 = vmatprep.subr.bf16.mxu0 %v1134_v1  ;;  %v1139_v6 = vld [vmem:[#allocation5 + $0xc8] sm:$0xff]   ;;  %v1142_v9 = vld [vmem:[#allocation5 + $0x50] sm:$0xff]   ;;  %s1320_s12 = smov [#allocation8]  }
  0x38   :  { %v1136_v3 = vld [vmem:[#allocation5] sm:$0xff]   ;;  %1029 = vmatprep.subr.bf16.mxu1 %v1135_v2  ;;  %v1140_v7 = vld [vmem:[#allocation5 + $0x8] sm:$0xff]   ;;  %v1143_v10 = vld [vmem:[#allocation5 + $0xd0] sm:$0xff]   ;;  %s916_s13 = sshll.u32 %s1320_s12, 4  ;;  %s917_s13 = int_to_ptr.vmem [resolvable:$true] %s916_s13 }
  0x39   :  { %v1137_v4 = vld [vmem:[#allocation5 + $0x80] sm:$0xff]   ;;  %1008 = vmatpush3.bf16.msra.mxu0 %v1136_v3  ;;  %v1141_v8 = vld [vmem:[#allocation5 + $0x88] sm:$0xff]   ;;  %v1144_v11 = vld [vmem:[#allocation5 + $0x10] sm:$0xff]   ;;  %s1284_s14 = scalar_lea.vmem %s917_s13, 128  ;;  %p1289_p11 = scmp.lt.s32.totalorder %s917_s13, %s917_s13 }
  0x3a   :  { %1030 = vmatpush3.bf16.msra.mxu1 %v1137_v4  ;;  %1009 = vmatprep.subr.bf16.mxu0 %v1138_v5  ;;  %v1145_v12 = vld [vmem:[#allocation5 + $0x90] sm:$0xff]   ;;  %v1146_v13 = vld [vmem:[#allocation5 + $0x58] sm:$0xff]   ;;  %v1150_v17 = vld [vmem:[#allocation5 + $0x60] sm:$0xff]   ;;  %p1285_p10 = scmp.ne.s32.totalorder %s917_s13, %s1284_s14  ;;  %p1290_p12 = scmp.lt.s32.totalorder %s1284_s14, %s1284_s14 }
  0x3b   :  { %1031 = vmatprep.subr.bf16.mxu1 %v1139_v6  ;;  %v1147_v14 = vld [vmem:[#allocation5 + $0xd8] sm:$0xff]   ;;  %v1151_v18 = vld [vmem:[#allocation5 + $0xe0] sm:$0xff]   ;;  %v1154_v21 = vld [vmem:[#allocation5 + $0x68] sm:$0xff]  }
  0x3c   :  { %v1148_v15 = vld [vmem:[#allocation5 + $0x18] sm:$0xff]   ;;  %v1152_v19 = vld [vmem:[#allocation5 + $0x20] sm:$0xff]   ;;  %v1155_v22 = vld [vmem:[#allocation5 + $0xe8] sm:$0xff]   ;;  %p1291_p13 = por %p1290_p12, %p1289_p11 }
  0x3d   :  { %1010 = vmatpush3.bf16.msra.mxu0 %v1140_v7  ;;  %v1149_v16 = vld [vmem:[#allocation5 + $0x98] sm:$0xff]   ;;  %v1153_v20 = vld [vmem:[#allocation5 + $0xa0] sm:$0xff]   ;;  %v1156_v23 = vld [vmem:[#allocation5 + $0x28] sm:$0xff]  }
  0x3e   :  { %1032 = vmatpush3.bf16.msra.mxu1 %v1141_v8  ;;  %1011 = vmatprep.subr.bf16.mxu0 %v1142_v9  ;;  %v1157_v24 = vld [vmem:[#allocation5 + $0xa8] sm:$0xff]   ;;  %v1158_v25 = vld [vmem:[#allocation5 + $0x70] sm:$0xff]   ;;  %v1162_v29 = vld [vmem:[#allocation5 + $0x78] sm:$0xff]   ;;  %p1292_p0 = pnand %p1291_p13, %p1285_p10 }
  0x3f   :  { %1033 = vmatprep.subr.bf16.mxu1 %v1143_v10  ;;  %v1159_v26 = vld [vmem:[#allocation5 + $0xf0] sm:$0xff]   ;;  %v1163_v30 = vld [vmem:[#allocation5 + $0xf8] sm:$0xff]   ;;  %v64_v33 = vld [vmem:[#allocation2] sm:$0xff] }
  0x40   :  { %v1160_v27 = vld [vmem:[#allocation5 + $0x30] sm:$0xff]   ;;  %v1164_v31 = vld [vmem:[#allocation5 + $0x38] sm:$0xff]   ;;  %v65_v34 = vld [vmem:[#allocation2 + $0x8] sm:$0xff]  ;;  %v926_v35 = vcombine.low %v64_v33, %v64_v33  ;;  %v927_v36 = vcombine.high %v64_v33, %v64_v33 }
  0x41   :  { %1012 = vmatpush3.bf16.msra.mxu0 %v1144_v11  ;;  %v1161_v28 = vld [vmem:[#allocation5 + $0xb0] sm:$0xff]   ;;  %v1165_v32 = vld [vmem:[#allocation5 + $0xb8] sm:$0xff]   ;;  %v928_v37 = vcombine.low %v65_v34, %v65_v34  ;;  %v929_v38 = vcombine.high %v65_v34, %v65_v34  ;;  %v1170_v39 = vld [vmem:[#allocation5 + $0x140] sm:$0xff]   ;;  %v775_v34 = vlaneseq }
  0x42   :  { %1034 = vmatpush3.bf16.msra.mxu1 %v1145_v12  ;;  %1013 = vmatprep.subr.bf16.mxu0 %v1146_v13  ;;  %v1171_v40 = vld [vmem:[#allocation5 + $0x1c0] sm:$0xff]   ;;  %v1174_v43 = vld [vmem:[#allocation5 + $0x148] sm:$0xff]   ;;  %v1178_v47 = vld [vmem:[#allocation5 + $0x150] sm:$0xff]  }
  0x43   :  { %1035 = vmatprep.subr.bf16.mxu1 %v1147_v14  ;;  %640 = vmatprep.mubr.bf16.mxu0 %v927_v36  ;;  %v1172_v41 = vld [vmem:[#allocation5 + $0x100] sm:$0xff]   ;;  %v1175_v44 = vld [vmem:[#allocation5 + $0x1c8] sm:$0xff]   ;;  %v1179_v48 = vld [vmem:[#allocation5 + $0x1d0] sm:$0xff]  }
  0x44   :  { %680 = vmatprep.mubr.bf16.mxu1 %v929_v38  ;;  %v1173_v42 = vld [vmem:[#allocation5 + $0x180] sm:$0xff]   ;;  %v1176_v45 = vld [vmem:[#allocation5 + $0x108] sm:$0xff]   ;;  %v1180_v49 = vld [vmem:[#allocation5 + $0x110] sm:$0xff]  }
  0x45   :  { %1014 = vmatpush3.bf16.msra.mxu0 %v1148_v15  ;;  %v1177_v46 = vld [vmem:[#allocation5 + $0x188] sm:$0xff]   ;;  %v1181_v50 = vld [vmem:[#allocation5 + $0x190] sm:$0xff]   ;;  %v1182_v51 = vld [vmem:[#allocation5 + $0x158] sm:$0xff]   ;;  %v1318_v15 = vmov 0.0  }
  0x46   :  { %1036 = vmatpush3.bf16.msra.mxu1 %v1149_v16  ;;  %1015 = vmatprep.subr.bf16.mxu0 %v1150_v17  ;;  %v1183_v52 = vld [vmem:[#allocation5 + $0x1d8] sm:$0xff]   ;;  %v1186_v55 = vld [vmem:[#allocation5 + $0x160] sm:$0xff]   ;;  %v1190_v59 = vld [vmem:[#allocation5 + $0x168] sm:$0xff]  }
  0x47   :  { %1037 = vmatprep.subr.bf16.mxu1 %v1151_v18  ;;  %v1184_v53 = vld [vmem:[#allocation5 + $0x118] sm:$0xff]   ;;  %v1187_v56 = vld [vmem:[#allocation5 + $0x1e0] sm:$0xff]   ;;  %v1191_v60 = vld [vmem:[#allocation5 + $0x1e8] sm:$0xff]  }
  0x48   :  { %v1185_v54 = vld [vmem:[#allocation5 + $0x198] sm:$0xff]   ;;  %v1188_v57 = vld [vmem:[#allocation5 + $0x120] sm:$0xff]   ;;  %v1192_v61 = vld [vmem:[#allocation5 + $0x128] sm:$0xff]  }
  0x49   :  { %1016 = vmatpush3.bf16.msra.mxu0 %v1152_v19  ;;  %v1189_v58 = vld [vmem:[#allocation5 + $0x1a0] sm:$0xff]   ;;  %v1193_v62 = vld [vmem:[#allocation5 + $0x1a8] sm:$0xff]   ;;  %v1194_v63 = vld [vmem:[#allocation5 + $0x170] sm:$0xff]  }
  0x4a   :  { %1038 = vmatpush3.bf16.msra.mxu1 %v1153_v20  ;;  %1017 = vmatprep.subr.bf16.mxu0 %v1154_v21  ;;  %v1195_v0 = vld [vmem:[#allocation5 + $0x1f0] sm:$0xff]   ;;  %v1198_v3 = vld [vmem:[#allocation5 + $0x178] sm:$0xff]   ;;  %v769_v11 = vld [vmem:[%s1420_s1] sm:$0xff] }
  0x4b   :  { %1039 = vmatprep.subr.bf16.mxu1 %v1155_v22  ;;  %v1196_v1 = vld [vmem:[#allocation5 + $0x130] sm:$0xff]   ;;  %v1199_v4 = vld [vmem:[#allocation5 + $0x1f8] sm:$0xff]   ;;  %772 = vperm.xlu0 %1133, %v769_v11   ;;  %v1206_v14 = vld [vmem:[#allocation7] sm:$0xff]  }
  0x4c   :  { %v1197_v2 = vld [vmem:[#allocation5 + $0x1b0] sm:$0xff]   ;;  %v1200_v5 = vld [vmem:[#allocation5 + $0x138] sm:$0xff]   ;;  %v1207_v16 = vld [vmem:[#allocation7 + $0x8] sm:$0xff]  }
  0x4d   :  { %1018 = vmatpush3.bf16.msra.mxu0 %v1156_v23  ;;  %v1201_v6 = vld [vmem:[#allocation5 + $0x1b8] sm:$0xff]   ;;  %v66_v7 = vld [vmem:[#allocation2 + $0x10] sm:$0xff]  ;;  %v1210_v19 = vld [vmem:[#allocation7 + $0x20] sm:$0xff]  }
  0x4e   :  { %1040 = vmatpush3.bf16.msra.mxu1 %v1157_v24  ;;  %1019 = vmatprep.subr.bf16.mxu0 %v1158_v25  ;;  %v930_v8 = vcombine.low %v66_v7, %v66_v7  ;;  %v931_v9 = vcombine.high %v66_v7, %v66_v7  ;;  %v67_v10 = vld [vmem:[#allocation2 + $0x18] sm:$0xff]  ;;  %v1208_v17 = vld [vmem:[#allocation7 + $0x10] sm:$0xff]   ;;  %v1211_v20 = vld [vmem:[#allocation7 + $0x28] sm:$0xff]  }
  0x4f   :  { %1041 = vmatprep.subr.bf16.mxu1 %v1159_v26  ;;  %v932_v12 = vcombine.low %v67_v10, %v67_v10  ;;  %v933_v13 = vcombine.high %v67_v10, %v67_v10  ;;  %v1209_v18 = vld [vmem:[#allocation7 + $0x18] sm:$0xff]   ;;  %v1212_v21 = vld [vmem:[#allocation7 + $0x30] sm:$0xff]  }
  0x50   :  { %v1213_v22 = vld [vmem:[#allocation7 + $0x38] sm:$0xff]  }
  0x51   :  { %1020 = vmatpush3.bf16.msra.mxu0 %v1160_v27 }
  0x52   :  { %1042 = vmatpush3.bf16.msra.mxu1 %v1161_v28  ;;  %1021 = vmatprep.subr.bf16.mxu0 %v1162_v29 }
  0x53   :  { %1043 = vmatprep.subr.bf16.mxu1 %v1163_v30 }
  0x55   :  { %1022 = vmatpush3.bf16.msra.mxu0 %v1164_v31 }
  0x56   :  { %1044 = vmatpush3.bf16.msra.mxu1 %v1165_v32  ;;  %1051 = vmatprep.subr.bf16.mxu0 %v1170_v39 }
  0x57   :  { %1073 = vmatprep.subr.bf16.mxu1 %v1171_v40 }
  0x58   :  { %641 = vmatmul.mubr.bf16.vlgmr.msra.gmra.mrb[0].mxu0 %v926_v35  ;;  %v776_v35 = vshrl.u32 %v775_v34, 7 }
  0x59   :  { %681 = vmatmul.mubr.bf16.vlgmr.msra.gmra.mrb[0].mxu1 %v928_v37  ;;  %1052 = vmatpush3.bf16.msra.mxu0 %v1172_v41  ;;  %v768_v37 = vld [vmem:[%s1422_s3] sm:$0x3] }
  0x5a   :  { %1074 = vmatpush3.bf16.msra.mxu1 %v1173_v42  ;;  %1053 = vmatprep.subr.bf16.mxu0 %v1174_v43  ;;  %v777_v36 = vsub.s32 0, %v776_v35 }
  0x5b   :  { %1075 = vmatprep.subr.bf16.mxu1 %v1175_v44  ;;  %720 = vmatprep.mubr.bf16.mxu0 %v931_v9 }
  0x5c   :  { %760 = vmatprep.mubr.bf16.mxu1 %v933_v13  ;;  %v778_v41 = vrot.slane %v768_v37, %v777_v36 }
  0x5d   :  { %1054 = vmatpush3.bf16.msra.mxu0 %v1176_v45 }
  0x5e   :  { %1076 = vmatpush3.bf16.msra.mxu1 %v1177_v46  ;;  %1055 = vmatprep.subr.bf16.mxu0 %v1178_v47 }
  0x5f   :  { %1077 = vmatprep.subr.bf16.mxu1 %v1179_v48 }
  0x61   :  { %1056 = vmatpush3.bf16.msra.mxu0 %v1180_v49 }
  0x62   :  { %1078 = vmatpush3.bf16.msra.mxu1 %v1181_v50  ;;  %1057 = vmatprep.subr.bf16.mxu0 %v1182_v51 }
  0x63   :  { %1079 = vmatprep.subr.bf16.mxu1 %v1183_v52 }
  0x65   :  { %1058 = vmatpush3.bf16.msra.mxu0 %v1184_v53 }
  0x66   :  { %1080 = vmatpush3.bf16.msra.mxu1 %v1185_v54  ;;  %1059 = vmatprep.subr.bf16.mxu0 %v1186_v55  ;;  %v792_v55 = vsub.s32 1, %v776_v35 }
  0x67   :  { %1081 = vmatprep.subr.bf16.mxu1 %v1187_v56  ;;  %v789_v56 = vsub.f32 0.0, %v768_v37 }
  0x69   :  { %1060 = vmatpush3.bf16.msra.mxu0 %v1188_v57 }
  0x6a   :  { %1082 = vmatpush3.bf16.msra.mxu1 %v1189_v58  ;;  %1061 = vmatprep.subr.bf16.mxu0 %v1190_v59  ;;  %v793_v59 = vrot.slane %v789_v56, %v792_v55 }
  0x6b   :  { %1083 = vmatprep.subr.bf16.mxu1 %v1191_v60 }
  0x6d   :  { %1062 = vmatpush3.bf16.msra.mxu0 %v1192_v61 }
  0x6e   :  { %1084 = vmatpush3.bf16.msra.mxu1 %v1193_v62  ;;  %1063 = vmatprep.subr.bf16.mxu0 %v1194_v63 }
  0x6f   :  { %1085 = vmatprep.subr.bf16.mxu1 %v1195_v0 }
  0x71   :  { %1064 = vmatpush3.bf16.msra.mxu0 %v1196_v1 }
  0x72   :  { %1086 = vmatpush3.bf16.msra.mxu1 %v1197_v2  ;;  %1065 = vmatprep.subr.bf16.mxu0 %v1198_v3  ;;  %v998_v3 = vld [vmem:[%s1424_s5] ss:$0 sm:$0xff] }
  0x73   :  { %1087 = vmatprep.subr.bf16.mxu1 %v1199_v4 }
  0x75   :  { %1066 = vmatpush3.bf16.msra.mxu0 %v1200_v5 }
  0x76   :  { %1088 = vmatpush3.bf16.msra.mxu1 %v1201_v6  ;;  %1104 = vmatprep.subr.bf16.mxu0 %v1318_v15 }
  0x78   :  { %721 = vmatmul.mubr.bf16.vlgmr.msra.gmra.mrb[4].mxu0 %v930_v8 }
  0x79   :  { %761 = vmatmul.mubr.bf16.vlgmr.msra.gmra.mrb[4].mxu1 %v932_v12  ;;  %1105 = vmatpush3.bf16.msra.mxu0 %v1206_v14 }
  0x7a   :  { %1106 = vmatprep.subr.bf16.mxu0 %v1318_v15  ;;  %1120 = vmatprep.mubr.msk.bf16.mxu0 %vm1319_vm0, %v1318_v15 }
  0x7d   :  { %1107 = vmatpush3.bf16.msra.mxu0 %v1207_v16 }
  0x7e   :  { %1108 = vmatprep.subr.bf16.mxu0 %v1318_v15 }
  0x81   :  { %1109 = vmatpush3.bf16.msra.mxu0 %v1208_v17 }
  0x82   :  { %1110 = vmatprep.subr.bf16.mxu0 %v1318_v15 }
  0x85   :  { %1111 = vmatpush3.bf16.msra.mxu0 %v1209_v18 }
  0x86   :  { %1112 = vmatprep.subr.bf16.mxu0 %v1318_v15 }
  0x89   :  { %1113 = vmatpush3.bf16.msra.mxu0 %v1210_v19 }
  0x8a   :  { %1114 = vmatprep.subr.bf16.mxu0 %v1318_v15 }
  0x8d   :  { %1115 = vmatpush3.bf16.msra.mxu0 %v1211_v20 }
  0x8e   :  { %1116 = vmatprep.subr.bf16.mxu0 %v1318_v15 }
  0x91   :  { %1117 = vmatpush3.bf16.msra.mxu0 %v1212_v21 }
  0x92   :  { %1118 = vmatprep.subr.bf16.mxu0 %v1318_v15 }
  0x95   :  { %1119 = vmatpush3.bf16.msra.mxu0 %v1213_v22 }
  0xca   :  { %v773_v38 = vpop.permute.xlu0 %772 }
  0xcb   :  { %v779_v51 = vadd.f32 %v778_v41, %v773_v38 }
 0x12b   :  { %v1023_v23 = vpop.f32.mrb[0].mxu0 }
 0x12c   :  { %v1045_v24 = vpop.f32.mrb[0].mxu1  ;;  %v1024_v25 = vpop.f32.mrb[1].mxu0 }
 0x12d   :  { %v1046_v26 = vpop.f32.mrb[1].mxu1  ;;  %v1025_v27 = vadd.f32 %v1024_v25, %v1023_v23  ;;  %v1026_v29 = vpop.f32.mrb[2].mxu0 }
 0x12e   :  { %v1047_v28 = vadd.f32 %v1046_v26, %v1045_v24  ;;  %v1048_v30 = vpop.f32.mrb[2].mxu1  ;;  %v1027_v31 = vpop.f32.mrb[3].mxu0 }
 0x12f   :  { %v1049_v32 = vpop.f32.mrb[3].mxu1 }
 0x130   :  { %v683_v33 = vadd.f32 %v1047_v28, %v1025_v27 }
 0x14b   :  { %v1067_v39 = vpop.f32.mrb[4].mxu0 }
 0x14c   :  { %v1089_v40 = vpop.f32.mrb[4].mxu1  ;;  %v1068_v42 = vpop.f32.mrb[5].mxu0 }
 0x14d   :  { %v1090_v43 = vpop.f32.mrb[5].mxu1  ;;  %v1069_v44 = vadd.f32 %v1068_v42, %v1067_v39  ;;  %v1070_v46 = vpop.f32.mrb[6].mxu0 }
 0x14e   :  { %v1091_v45 = vadd.f32 %v1090_v43, %v1089_v40  ;;  %v1092_v47 = vpop.f32.mrb[6].mxu1  ;;  %v1071_v48 = vpop.f32.mrb[7].mxu0 }
 0x14f   :  { %v1093_v49 = vpop.f32.mrb[7].mxu1  ;;  %v723_v50 = vadd.f32 %v1069_v44, %v683_v33 }
 0x151   :  { %v763_v52 = vadd.f32 %v1091_v45, %v723_v50 }
 0x153   :  { %v780_v53 = vadd.f32 %v779_v51, %v763_v52 }
 0x155   :  { %v781_v54 = vmax.f32 %v780_v53, 0.0 }
 0x157   :  { %1214 = vrsqrt.f32 %v781_v54  ;;  %vm784_vm1 = vcmp.eq.f32.partialorder %v781_v54, inf  ;;  %v787_v60 = vand.u32 2147483648, %v781_v54  ;;  %vm786_vm2 = vcmp.eq.f32.partialorder %v781_v54, 0.0 }
 0x161   :  { %v1215_v57 = vpop.eup %1214 }
 0x162   :  { %v783_v58 = vmul.f32 %v1215_v57, %v781_v54 }
 0x164   :  { %v785_v61 = vsel %vm784_vm1, %v781_v54, %v783_v58 }
 0x165   :  { %v788_v62 = vsel %vm786_vm2, %v787_v60, %v785_v61 }
 0x166   :  { %v794_v63 = vmul.f32 %v793_v59, %v788_v62 }
 0x168   :  { %v795_v0 = vmul.f32 1.442695, %v794_v63 }
 0x16a   :  { %1216 = vpow2.f32 %v795_v0 }
 0x174   :  { %v1217_v1 = vpop.eup %1216 }
 0x175   :  { %v797_v2 = vpack.c.bf16 %v1217_v1, %v1217_v1 }
 0x177   :  { %1121 = vmatmul.mubr.bf16.vlgmr.msra.gmra.mrb[8].mxu0 %v797_v2 }
 0x24a   :  { %v903_v4 = vpop.f32.mrb[8].mxu0 }
 0x24b   :  { %v904_v5 = vadd.f32 %v998_v3, %v903_v4  ;;  %v1122_v6 = vpop.f32.mrb[9].mxu0 }
 0x24c   :  { %v906_v7 = vpop.f32.mrb[10].mxu0 }
 0x24d   :  { %909 = vst [vmem:[#allocation8] sm:$0xff] %v904_v5  ;;  %v1123_v8 = vpop.f32.mrb[11].mxu0 }
 0x24e   :  { %1295 = shalt.err (!%p1292_p0)
}
 0x24f   :  { %s1296_s5 = scalar_lea.hbm %s1425_s6, 128 }
 0x250   :  { %p1297_p1 = scmp.ne.s32.totalorder %s1425_s6, %s1296_s5  ;;  %p1300_p2 = scmp.lt.u32.totalorder %s1296_s5, %s1425_s6 }
 0x252   :  { %p1302_p3 = pnand %p1300_p2, %p1297_p1 }
 0x254   :  { %1305 = shalt.err (!%p1302_p3)
}
 0x255   :  { %919 = dma.vmem_to_hbm [thread:$0]  %s917_s13, 128, %s1425_s6, [#allocation4]  }
 0x256   :  { %1310 = dma.done.wait [#allocation4], 128  }
 0x257   :  { %1311 = vsyncadd [#allocation4], 4294967168 }
 0x258   :  { %923 = vsyncpa [#allocation3], 1 }
 0x259   :  { %924 = vsyncpa [#allocation6], 1 }
 0x25a   :  { %925 = vsyncpa [#allocation4], 1 }

</bundles_post_ra>
